<compile_context>
chip_gen: v6e
topology: v6e:2x2x1
jax: 0.10.0
libtpu: 0.0.40
codegen_flags: <defaults>
</compile_context>

<pallas_src>
import functools

import jax
import jax.numpy as jnp
from jax import lax
from jax.experimental import pallas as pl
from jax.experimental.pallas import tpu as pltpu

EPS = 1e-5

# Row offsets of each parameter vector inside the packed [_VEC_ROWS, 1] slab.
# Every offset is a multiple of 8, so every slice is sublane-aligned.
_VEC_LAYOUT = (
    ("b1", 0, 64), ("g1", 64, 64), ("be1", 128, 64),
    ("b2", 192, 16), ("g2", 208, 16), ("be2", 224, 16),
    ("b3", 240, 8), ("g3", 248, 8), ("be3", 256, 8),
    ("b4", 264, 1),
)
_VEC_ROWS = 272  # 265 used rows, padded up to a multiple of 8

# Row ranges inside the packed [32, 64] weight slab (w2 / w3 / fc4-as-column).
_W2_ROWS, _W3_ROWS, _W4_ROWS = (0, 16), (16, 24), (24, 32)


def dnn_kernel(x_ref, w1_ref, ws_ref, vs_ref, out_ref, *, inv_n, matmul_dtype):
    # ---- unpack the two parameter slabs (static, sublane-aligned slices) ----
    v = {name: vs_ref[off:off + size, :] for name, off, size in _VEC_LAYOUT}
    w2 = ws_ref[_W2_ROWS[0]:_W2_ROWS[1], 0:64]   # [16, 64]
    w3 = ws_ref[_W3_ROWS[0]:_W3_ROWS[1], 0:16]   # [ 8, 16]
    w4 = ws_ref[_W4_ROWS[0]:_W4_ROWS[1], 0:1]    # [ 8,  1]  fc4 weight as a column

    def bn_fold(h, g, be):
        """Training-mode BN stats over the batch (lane) axis of h [D, B].

        Two-pass, mean-shifted variance (robust vs. E[x^2]-mu^2 cancellation).
        Lane reductions run on the XLU, keeping the MXU free.  Returns the
        per-feature affine (scale, shift) with bn(h) == scale * h + shift so
        normalization can be folded into the next layer instead of being
        materialized as a full normalized [D, B] slab.
        """
        mu = jnp.sum(h, axis=-1, keepdims=True) * inv_n               # [D, 1]
        centered = h - mu
        var = jnp.sum(centered * centered, axis=-1, keepdims=True) * inv_n
        scale = g * lax.rsqrt(var + EPS)                              # [D, 1]
        shift = be - mu * scale                                       # [D, 1]
        return scale, shift

    # ---- fc1 + ReLU ----
    # Contract the feature axes of w1 [64, K] and x [B, K] directly on the MXU
    # (A @ B^T); emits the feature-major [64, B] tile with no wrapper transpose.
    x = x_ref[...].astype(matmul_dtype)
    w1 = w1_ref[...].astype(matmul_dtype)
    h1 = jnp.maximum(
        lax.dot_general(w1, x, (((1,), (1,)), ((), ())),
                        preferred_element_type=jnp.float32) + v["b1"], 0.0)    # [64, B]

    # ---- BN1 folded into fc2 ----
    s1, t1 = bn_fold(h1, v["g1"], v["be1"])
    bias2 = jnp.dot(w2, t1, preferred_element_type=jnp.float32) + v["b2"]      # [16, 1]
    h2 = jnp.maximum(
        jnp.dot(w2, s1 * h1, preferred_element_type=jnp.float32) + bias2, 0.0)  # [16, B]

    # ---- BN2 folded into fc3 ----
    s2, t2 = bn_fold(h2, v["g2"], v["be2"])
    bias3 = jnp.dot(w3, t2, preferred_element_type=jnp.float32) + v["b3"]      # [8, 1]
    h3 = jnp.maximum(
        jnp.dot(w3, s2 * h2, preferred_element_type=jnp.float32) + bias3, 0.0)  # [8, B]

    # ---- BN3 folded into fc4 ----
    # fc4 is a VPU broadcast-multiply + 8-row sublane reduce (avoids pushing a
    # degenerate N=1 matmul over the whole batch through the MXU).
    s3, t3 = bn_fold(h3, v["g3"], v["be3"])
    bias4 = jnp.sum(w4 * t3, axis=0, keepdims=True) + v["b4"]                  # [1, 1]
    out_ref[...] = jnp.sum((w4 * s3) * h3, axis=0, keepdims=True) + bias4      # [1, B]


def pack_params(params):
    """One-time packing of the 14 tiny fc2..fc4 / bias / BN tensors into two
    slabs so the kernel has 4 inputs (4 DMA descriptors) instead of 16."""
    wslab = jnp.zeros((32, 64), jnp.float32)
    wslab = wslab.at[_W2_ROWS[0]:_W2_ROWS[1], 0:64].set(params["w2"])
    wslab = wslab.at[_W3_ROWS[0]:_W3_ROWS[1], 0:16].set(params["w3"])
    wslab = wslab.at[_W4_ROWS[0]:_W4_ROWS[1], 0:1].set(params["w4"].reshape(8, 1))

    vslab = jnp.zeros((_VEC_ROWS, 1), jnp.float32)
    for name, off, size in _VEC_LAYOUT:
        vslab = vslab.at[off:off + size, 0].set(params[name].reshape(size))

    return {"w1": params["w1"], "wslab": wslab, "vslab": vslab}


def dnn_forward(x, packed, *, matmul_dtype=jnp.float32):
    """x: [B, input_size] f32 (natural layout).  packed: see pack_params()."""
    B, d_in = x.shape
    if B < 2:
        # Mirrors PyTorch: BatchNorm1d in training mode needs more than 1 sample.
        raise ValueError("training-mode BatchNorm1d requires batch size >= 2")

    # inv_n is a trace-time constant; a different B changes input shapes and
    # recompiles anyway.  (A recompile-free variant would pad B to a fixed
    # bucket and pass the real B / 1/B through an SMEM scalar + in-kernel iota
    # mask; omitted here since the demo uses a single batch size.)
    kernel = functools.partial(dnn_kernel, inv_n=1.0 / B, matmul_dtype=matmul_dtype)

    # VMEM request: activations + params with double-buffering headroom,
    # clamped to 48 MiB so the request stays safe on v7x's 64 MiB/TensorCore;
    # on v5e/v6e (128 MiB physical) this can be raised toward ~100 MiB if very
    # large batches are pushed through this monolithic (gridless) kernel.
    act_bytes = 4 * B * (d_in + 2 * 64 + 16 + 8 + 1)
    par_bytes = 4 * (64 * d_in + 32 * 64 + _VEC_ROWS)
    vmem_limit = int(min(max(2 * (act_bytes + par_bytes) + (2 << 20), 32 << 20), 48 << 20))

    vmem = pl.BlockSpec(memory_space=pltpu.MemorySpace.VMEM)
    out = pl.pallas_call(
        kernel,
        out_shape=jax.ShapeDtypeStruct((1, B), jnp.float32),
        in_specs=[vmem, vmem, vmem, vmem],
        out_specs=vmem,
        compiler_params=pltpu.CompilerParams(vmem_limit_bytes=vmem_limit),
    )(x, packed["w1"], packed["wslab"], packed["vslab"])

    # Lane-dense [1, B] slab -> [B, 1] like PyTorch (size-1 dim move: free).
    return out.reshape(B, 1)


def init_params(key, input_size):
    """Deterministic synthetic init matching the PyTorch module's shapes.
    Linear weights are [out, in] (PyTorch layout); biases / BN params are 1-D."""
    dims = [(input_size, 64), (64, 16), (16, 8), (8, 1)]
    params = {}
    keys = jax.random.split(key, 2 * len(dims))
    for i, (d_in, d_out) in enumerate(dims):
        bound = 1.0 / (d_in ** 0.5)
        params[f"w{i+1}"] = jax.random.uniform(
            keys[2 * i], (d_out, d_in), jnp.float32, -bound, bound)
        params[f"b{i+1}"] = jax.random.uniform(
            keys[2 * i + 1], (d_out,), jnp.float32, -bound, bound)
    # BatchNorm affine params (gamma=1, beta=0), PyTorch default init.
    for i, d in enumerate([64, 16, 8], start=1):
        params[f"g{i}"] = jnp.ones((d,), jnp.float32)
        params[f"be{i}"] = jnp.zeros((d,), jnp.float32)
    return params


def dnn_reference(x, params):
    """Independent pure-JAX (batch-major, two-pass BN) reference."""
    def bn(h, g, be):
        mu = jnp.mean(h, axis=0, keepdims=True)
        var = jnp.mean((h - mu) ** 2, axis=0, keepdims=True)  # biased, like PyTorch fwd
        return (h - mu) / jnp.sqrt(var + EPS) * g + be

    def lin(h, w, b):
        return h @ w.T + b.reshape(1, -1)

    h = bn(jnp.maximum(lin(x, params["w1"], params["b1"]), 0.0), params["g1"], params["be1"])
    h = bn(jnp.maximum(lin(h, params["w2"], params["b2"]), 0.0), params["g2"], params["be2"])
    h = bn(jnp.maximum(lin(h, params["w3"], params["b3"]), 0.0), params["g3"], params["be3"])
    return lin(h, params["w4"], params["b4"])


if __name__ == "__main__":
    key = jax.random.PRNGKey(0)
    k_x, k_p = jax.random.split(key)

    batch = 8
    input_size = 32
    x = jax.random.normal(k_x, (batch, input_size), dtype=jnp.float32)
    params = init_params(k_p, input_size)
    packed = pack_params(params)

    out = jax.block_until_ready(dnn_forward(x, packed))
    ref = dnn_reference(x, params)

    assert out.shape == (batch, 1)
    assert jnp.allclose(out, ref, atol=1e-4, rtol=1e-4), "mismatch vs reference"
    print("KERNEL_OK")
</pallas_src>

<mosaic_0001>
module attributes {stable_mosaic.version = 11 : i64} {
  func.func @dnn_kernel(%arg0: memref<8x32xf32, #tpu.memory_space<vmem>>, %arg1: memref<64x32xf32, #tpu.memory_space<vmem>>, %arg2: memref<32x64xf32, #tpu.memory_space<vmem>>, %arg3: memref<272x1xf32, #tpu.memory_space<vmem>>, %arg4: memref<1x8xf32, #tpu.memory_space<vmem>>) attributes {dimension_semantics = [], scalar_prefetch = 0 : i64, scratch_operands = 0 : i64, tpu.core_type = #tpu.core_type<tc>} {
    %c0 = arith.constant 0 : index
    %c0_0 = arith.constant 0 : index
    %0 = vector.load %arg3[%c0, %c0_0] : memref<272x1xf32, #tpu.memory_space<vmem>>, vector<64x1xf32>
    %c64 = arith.constant 64 : index
    %c0_1 = arith.constant 0 : index
    %1 = vector.load %arg3[%c64, %c0_1] : memref<272x1xf32, #tpu.memory_space<vmem>>, vector<64x1xf32>
    %c128 = arith.constant 128 : index
    %c0_2 = arith.constant 0 : index
    %2 = vector.load %arg3[%c128, %c0_2] : memref<272x1xf32, #tpu.memory_space<vmem>>, vector<64x1xf32>
    %c192 = arith.constant 192 : index
    %c0_3 = arith.constant 0 : index
    %3 = vector.load %arg3[%c192, %c0_3] : memref<272x1xf32, #tpu.memory_space<vmem>>, vector<16x1xf32>
    %c208 = arith.constant 208 : index
    %c0_4 = arith.constant 0 : index
    %4 = vector.load %arg3[%c208, %c0_4] : memref<272x1xf32, #tpu.memory_space<vmem>>, vector<16x1xf32>
    %c224 = arith.constant 224 : index
    %c0_5 = arith.constant 0 : index
    %5 = vector.load %arg3[%c224, %c0_5] : memref<272x1xf32, #tpu.memory_space<vmem>>, vector<16x1xf32>
    %c240 = arith.constant 240 : index
    %c0_6 = arith.constant 0 : index
    %6 = vector.load %arg3[%c240, %c0_6] : memref<272x1xf32, #tpu.memory_space<vmem>>, vector<8x1xf32>
    %c248 = arith.constant 248 : index
    %c0_7 = arith.constant 0 : index
    %7 = vector.load %arg3[%c248, %c0_7] : memref<272x1xf32, #tpu.memory_space<vmem>>, vector<8x1xf32>
    %c256 = arith.constant 256 : index
    %c0_8 = arith.constant 0 : index
    %8 = vector.load %arg3[%c256, %c0_8] : memref<272x1xf32, #tpu.memory_space<vmem>>, vector<8x1xf32>
    %c264 = arith.constant 264 : index
    %c0_9 = arith.constant 0 : index
    %9 = vector.load %arg3[%c264, %c0_9] : memref<272x1xf32, #tpu.memory_space<vmem>>, vector<1x1xf32>
    %c0_10 = arith.constant 0 : index
    %c0_11 = arith.constant 0 : index
    %10 = vector.load %arg2[%c0_10, %c0_11] : memref<32x64xf32, #tpu.memory_space<vmem>>, vector<16x64xf32>
    %c16 = arith.constant 16 : index
    %c0_12 = arith.constant 0 : index
    %11 = vector.load %arg2[%c16, %c0_12] : memref<32x64xf32, #tpu.memory_space<vmem>>, vector<8x16xf32>
    %c24 = arith.constant 24 : index
    %c0_13 = arith.constant 0 : index
    %12 = vector.load %arg2[%c24, %c0_13] : memref<32x64xf32, #tpu.memory_space<vmem>>, vector<8x1xf32>
    %c0_14 = arith.constant 0 : index
    %c0_15 = arith.constant 0 : index
    %13 = vector.load %arg0[%c0_14, %c0_15] : memref<8x32xf32, #tpu.memory_space<vmem>>, vector<8x32xf32>
    %c0_16 = arith.constant 0 : index
    %c0_17 = arith.constant 0 : index
    %14 = vector.load %arg1[%c0_16, %c0_17] : memref<64x32xf32, #tpu.memory_space<vmem>>, vector<64x32xf32>
    %cst = arith.constant dense<0.000000e+00> : vector<64x8xf32>
    %15 = tpu.matmul %14, %13, %cst {dimension_numbers = #tpu.dot_dimension_numbers<[1], [1], [0], [0], [0, 0, 1, 0], [], []>} : vector<64x32xf32>, vector<8x32xf32>, vector<64x8xf32> -> vector<64x8xf32>
    %16 = vector.broadcast %0 : vector<64x1xf32> to vector<64x8xf32>
    %17 = arith.addf %15, %16 : vector<64x8xf32>
    %cst_18 = arith.constant 0.000000e+00 : f32
    %18 = vector.broadcast %cst_18 : f32 to vector<64x8xf32>
    %19 = arith.maximumf %17, %18 : vector<64x8xf32>
    %cst_19 = arith.constant dense<0.000000e+00> : vector<64xf32>
    %20 = vector.multi_reduction <add>, %19, %cst_19 [1] : vector<64x8xf32> to vector<64xf32>
    %21 = vector.shape_cast %20 : vector<64xf32> to vector<64x1xf32>
    %cst_20 = arith.constant 1.250000e-01 : f32
    %22 = vector.broadcast %cst_20 : f32 to vector<64x1xf32>
    %23 = arith.mulf %21, %22 : vector<64x1xf32>
    %24 = vector.broadcast %23 : vector<64x1xf32> to vector<64x8xf32>
    %25 = arith.subf %19, %24 : vector<64x8xf32>
    %26 = arith.mulf %25, %25 : vector<64x8xf32>
    %cst_21 = arith.constant dense<0.000000e+00> : vector<64xf32>
    %27 = vector.multi_reduction <add>, %26, %cst_21 [1] : vector<64x8xf32> to vector<64xf32>
    %28 = vector.shape_cast %27 : vector<64xf32> to vector<64x1xf32>
    %cst_22 = arith.constant 1.250000e-01 : f32
    %29 = vector.broadcast %cst_22 : f32 to vector<64x1xf32>
    %30 = arith.mulf %28, %29 : vector<64x1xf32>
    %cst_23 = arith.constant 9.99999974E-6 : f32
    %31 = vector.broadcast %cst_23 : f32 to vector<64x1xf32>
    %32 = arith.addf %30, %31 : vector<64x1xf32>
    %33 = math.rsqrt %32 : vector<64x1xf32>
    %34 = arith.mulf %1, %33 : vector<64x1xf32>
    %35 = arith.mulf %23, %34 : vector<64x1xf32>
    %36 = arith.subf %2, %35 : vector<64x1xf32>
    %cst_24 = arith.constant dense<0.000000e+00> : vector<16x1xf32>
    %37 = tpu.matmul %10, %36, %cst_24 {dimension_numbers = #tpu.dot_dimension_numbers<[1], [0], [0], [1], [0, 0, 1, 1], [], []>} : vector<16x64xf32>, vector<64x1xf32>, vector<16x1xf32> -> vector<16x1xf32>
    %38 = arith.addf %37, %3 : vector<16x1xf32>
    %39 = vector.broadcast %34 : vector<64x1xf32> to vector<64x8xf32>
    %40 = arith.mulf %39, %19 : vector<64x8xf32>
    %cst_25 = arith.constant dense<0.000000e+00> : vector<16x8xf32>
    %41 = tpu.matmul %10, %40, %cst_25 {dimension_numbers = #tpu.dot_dimension_numbers<[1], [0], [0], [1], [0, 0, 1, 1], [], []>} : vector<16x64xf32>, vector<64x8xf32>, vector<16x8xf32> -> vector<16x8xf32>
    %42 = vector.broadcast %38 : vector<16x1xf32> to vector<16x8xf32>
    %43 = arith.addf %41, %42 : vector<16x8xf32>
    %cst_26 = arith.constant 0.000000e+00 : f32
    %44 = vector.broadcast %cst_26 : f32 to vector<16x8xf32>
    %45 = arith.maximumf %43, %44 : vector<16x8xf32>
    %cst_27 = arith.constant dense<0.000000e+00> : vector<16xf32>
    %46 = vector.multi_reduction <add>, %45, %cst_27 [1] : vector<16x8xf32> to vector<16xf32>
    %47 = vector.shape_cast %46 : vector<16xf32> to vector<16x1xf32>
    %cst_28 = arith.constant 1.250000e-01 : f32
    %48 = vector.broadcast %cst_28 : f32 to vector<16x1xf32>
    %49 = arith.mulf %47, %48 : vector<16x1xf32>
    %50 = vector.broadcast %49 : vector<16x1xf32> to vector<16x8xf32>
    %51 = arith.subf %45, %50 : vector<16x8xf32>
    %52 = arith.mulf %51, %51 : vector<16x8xf32>
    %cst_29 = arith.constant dense<0.000000e+00> : vector<16xf32>
    %53 = vector.multi_reduction <add>, %52, %cst_29 [1] : vector<16x8xf32> to vector<16xf32>
    %54 = vector.shape_cast %53 : vector<16xf32> to vector<16x1xf32>
    %cst_30 = arith.constant 1.250000e-01 : f32
    %55 = vector.broadcast %cst_30 : f32 to vector<16x1xf32>
    %56 = arith.mulf %54, %55 : vector<16x1xf32>
    %cst_31 = arith.constant 9.99999974E-6 : f32
    %57 = vector.broadcast %cst_31 : f32 to vector<16x1xf32>
    %58 = arith.addf %56, %57 : vector<16x1xf32>
    %59 = math.rsqrt %58 : vector<16x1xf32>
    %60 = arith.mulf %4, %59 : vector<16x1xf32>
    %61 = arith.mulf %49, %60 : vector<16x1xf32>
    %62 = arith.subf %5, %61 : vector<16x1xf32>
    %cst_32 = arith.constant dense<0.000000e+00> : vector<8x1xf32>
    %63 = tpu.matmul %11, %62, %cst_32 {dimension_numbers = #tpu.dot_dimension_numbers<[1], [0], [0], [1], [0, 0, 1, 1], [], []>} : vector<8x16xf32>, vector<16x1xf32>, vector<8x1xf32> -> vector<8x1xf32>
    %64 = arith.addf %63, %6 : vector<8x1xf32>
    %65 = vector.broadcast %60 : vector<16x1xf32> to vector<16x8xf32>
    %66 = arith.mulf %65, %45 : vector<16x8xf32>
    %cst_33 = arith.constant dense<0.000000e+00> : vector<8x8xf32>
    %67 = tpu.matmul %11, %66, %cst_33 {dimension_numbers = #tpu.dot_dimension_numbers<[1], [0], [0], [1], [0, 0, 1, 1], [], []>} : vector<8x16xf32>, vector<16x8xf32>, vector<8x8xf32> -> vector<8x8xf32>
    %68 = vector.broadcast %64 : vector<8x1xf32> to vector<8x8xf32>
    %69 = arith.addf %67, %68 : vector<8x8xf32>
    %cst_34 = arith.constant 0.000000e+00 : f32
    %70 = vector.broadcast %cst_34 : f32 to vector<8x8xf32>
    %71 = arith.maximumf %69, %70 : vector<8x8xf32>
    %cst_35 = arith.constant dense<0.000000e+00> : vector<8xf32>
    %72 = vector.multi_reduction <add>, %71, %cst_35 [1] : vector<8x8xf32> to vector<8xf32>
    %73 = vector.shape_cast %72 : vector<8xf32> to vector<8x1xf32>
    %cst_36 = arith.constant 1.250000e-01 : f32
    %74 = vector.broadcast %cst_36 : f32 to vector<8x1xf32>
    %75 = arith.mulf %73, %74 : vector<8x1xf32>
    %76 = vector.broadcast %75 : vector<8x1xf32> to vector<8x8xf32>
    %77 = arith.subf %71, %76 : vector<8x8xf32>
    %78 = arith.mulf %77, %77 : vector<8x8xf32>
    %cst_37 = arith.constant dense<0.000000e+00> : vector<8xf32>
    %79 = vector.multi_reduction <add>, %78, %cst_37 [1] : vector<8x8xf32> to vector<8xf32>
    %80 = vector.shape_cast %79 : vector<8xf32> to vector<8x1xf32>
    %cst_38 = arith.constant 1.250000e-01 : f32
    %81 = vector.broadcast %cst_38 : f32 to vector<8x1xf32>
    %82 = arith.mulf %80, %81 : vector<8x1xf32>
    %cst_39 = arith.constant 9.99999974E-6 : f32
    %83 = vector.broadcast %cst_39 : f32 to vector<8x1xf32>
    %84 = arith.addf %82, %83 : vector<8x1xf32>
    %85 = math.rsqrt %84 : vector<8x1xf32>
    %86 = arith.mulf %7, %85 : vector<8x1xf32>
    %87 = arith.mulf %75, %86 : vector<8x1xf32>
    %88 = arith.subf %8, %87 : vector<8x1xf32>
    %89 = arith.mulf %12, %88 : vector<8x1xf32>
    %cst_40 = arith.constant dense<0.000000e+00> : vector<1xf32>
    %90 = vector.multi_reduction <add>, %89, %cst_40 [0] : vector<8x1xf32> to vector<1xf32>
    %91 = vector.shape_cast %90 : vector<1xf32> to vector<1x1xf32>
    %92 = arith.addf %91, %9 : vector<1x1xf32>
    %93 = arith.mulf %12, %86 : vector<8x1xf32>
    %94 = vector.broadcast %93 : vector<8x1xf32> to vector<8x8xf32>
    %95 = arith.mulf %94, %71 : vector<8x8xf32>
    %cst_41 = arith.constant dense<0.000000e+00> : vector<8xf32>
    %96 = vector.multi_reduction <add>, %95, %cst_41 [0] : vector<8x8xf32> to vector<8xf32>
    %97 = vector.shape_cast %96 : vector<8xf32> to vector<1x8xf32>
    %98 = vector.broadcast %92 : vector<1x1xf32> to vector<1x8xf32>
    %99 = arith.addf %97, %98 : vector<1x8xf32>
    %c0_42 = arith.constant 0 : index
    %c0_43 = arith.constant 0 : index
    %100 = vector.load %arg4[%c0_42, %c0_43] : memref<1x8xf32, #tpu.memory_space<vmem>>, vector<1x8xf32>
    tpu.vector_store %arg4[%c0_42, %c0_43], %99 {strides = array<i32>} : memref<1x8xf32, #tpu.memory_space<vmem>>, vector<1x8xf32>,
    return
  }
}

</mosaic_0001>

<bundles_post_ra>
// kernel: tpu_custom_call.1
= control target key start
LH: loop header
LB: loop body
LE: loop exit
PB: predicated region body
PF: predicated region fallthrough
CT: control target
= control target key end

     0   :  { %vm105_vm0 = vcmask 261120   ;;  %v1003_v3 = vmov 0   ;;  %s1285_s0 = inlined_call_operand.vmem [shape: f32[8,32], index: 0, kind: input, shape index: {}]   ;;  %s1286_s1 = inlined_call_operand.vmem [shape: f32[64,32], index: 1, kind: input, shape index: {}]   ;;  %s1287_s2 = inlined_call_operand.vmem [shape: f32[32,64], index: 2, kind: input, shape index: {}]   ;;  %s1288_s3 = inlined_call_operand.vmem [shape: f32[272,1], index: 3, kind: input, shape index: {}]   ;;  %s1289_s4 = inlined_call_operand.hbm [shape: f32[1,8], index: 4, kind: output, shape index: {}]  }
   0x1   :  { %v56_v0 = vld [vmem:[%s1285_s0] sm:$0xff]  ;;  %v58_v2 = vld [vmem:[%s1286_s1 + $0x8] sm:$0xff]  ;;  %957 = vset.pattern.permute.xlu0 %v1003_v3  ;;  %v59_v4 = vld [vmem:[%s1286_s1 + $0x10] sm:$0xff]  ;;  %958 = vset.pattern.permute.xlu1 %v1003_v3 }
   0x2   :  { %v57_v1 = vld [vmem:[%s1286_s1] sm:$0xff]  ;;  %887 = vmatprep.subr.msk.mxu0 %vm105_vm0, %v56_v0  ;;  %v25_v5 = vld [vmem:[%s1288_s3 + $0x38] sm:$0xff]  ;;  %v23_v6 = vld [vmem:[%s1288_s3 + $0x28] sm:$0xff] }
   0x3   :  { %889 = vmatprep.mubr.msk.f32.mxu0 %vm105_vm0, %v57_v1  ;;  %888 = vmatpush3.xpose.msk.msra.mxu0 %vm105_vm0, %v56_v0  ;;  %v24_v7 = vld [vmem:[%s1288_s3 + $0x30] sm:$0xff]  ;;  %v22_v8 = vld [vmem:[%s1288_s3 + $0x20] sm:$0xff] }
   0x4   :  { %102 = vperm.xlu0 %957, %v25_v5   ;;  %92 = vperm.xlu1 %958, %v23_v6  }
   0x6   :  { %890 = vmatmul.mubr.msk.f32.vlgmr.msra.gmra.mxu0 %vm105_vm0, %v58_v2 }
   0x7   :  { %9 = vsyncpa [#allocation3], 0  ;;  %892 = vmatprep.mubr.msk.f32.mxu0 %vm105_vm0, %v59_v4  ;;  %v60_v9 = vld [vmem:[%s1286_s1 + $0x18] sm:$0xff]  ;;  %v61_v10 = vld [vmem:[%s1286_s1 + $0x20] sm:$0xff]  ;;  %vm246_vm1 = vcmask 64512   ;;  %vm367_vm2 = vcmask 523264  }
   0x8   :  { %97 = vperm.xlu0 %957, %v24_v7   ;;  %87 = vperm.xlu1 %958, %v22_v8   ;;  %v21_v11 = vld [vmem:[%s1288_s3 + $0x18] sm:$0xff]  ;;  %v20_v12 = vld [vmem:[%s1288_s3 + $0x10] sm:$0xff]  ;;  %v62_v13 = vld [vmem:[%s1286_s1 + $0x28] sm:$0xff]  ;;  %vm1005_vm3 = vmmov 0   ;;  %vm614_vm4 = vcmask 130048   ;;  %vm792_vm5 = vcmask 7168  }
   0x9   :  { %v63_v14 = vld [vmem:[%s1286_s1 + $0x30] sm:$0xff]  ;;  %v19_v15 = vld [vmem:[%s1288_s3 + $0x8] sm:$0xff]  ;;  %v18_v16 = vld [vmem:[%s1288_s3] sm:$0xff]  ;;  %vm821_vm6 = vcmask 57344  }
   0xa   :  { %893 = vmatmul.mubr.msk.f32.gmra.mxu0 %vm105_vm0, %v60_v9  ;;  %v64_v17 = vld [vmem:[%s1286_s1 + $0x38] sm:$0xff] }
   0xb   :  { %895 = vmatprep.mubr.msk.f32.mxu0 %vm105_vm0, %v61_v10 }
   0xc   :  { %82 = vperm.xlu0 %957, %v21_v11   ;;  %77 = vperm.xlu1 %958, %v20_v12  }
   0xe   :  { %896 = vmatmul.mubr.msk.f32.gmra.mxu0 %vm105_vm0, %v62_v13 }
   0xf   :  { %898 = vmatprep.mubr.msk.f32.mxu0 %vm105_vm0, %v63_v14 }
  0x10   :  { %72 = vperm.xlu0 %957, %v19_v15   ;;  %67 = vperm.xlu1 %958, %v18_v16  }
  0x12   :  { %899 = vmatmul.mubr.msk.f32.gmra.mxu0 %vm105_vm0, %v64_v17 }
  0x7f   :  { %v103_v18 = vpop.permute.xlu0 %102  ;;  %v93_v21 = vpop.permute.xlu1 %92 }
  0x83   :  { %v98_v22 = vpop.permute.xlu0 %97  ;;  %v88_v26 = vpop.permute.xlu1 %87 }
  0x87   :  { %v83_v27 = vpop.permute.xlu0 %82  ;;  %v78_v36 = vpop.permute.xlu1 %77 }
  0x8b   :  { %v73_v37 = vpop.permute.xlu0 %72  ;;  %v68_v48 = vpop.permute.xlu1 %67 }
  0xc6   :  { %v891_v19 = vpop.f32.mrf.mxu0 }
  0xc7   :  { %v205_v42 = vadd.f32 %v891_v19, %v73_v37 }
  0xc8   :  { %v199_v20 = vpop.f32.mrf.mxu0 }
  0xc9   :  { %v1109_v49 = vmax.f32 %v205_v42, 0.0  ;;  %v200_v51 = vadd.f32 %v199_v20, %v68_v48 }
  0xca   :  { %v894_v23 = vpop.f32.mrf.mxu0 }
  0xcb   :  { %v215_v33 = vadd.f32 %v894_v23, %v83_v27  ;;  %v250_v54 = vsel %vm246_vm1, %v1109_v49, 0.0  ;;  %v1119_v55 = vmax.f32 %v200_v51, 0.0 }
  0xcc   :  { %v209_v24 = vpop.f32.mrf.mxu0 }
  0xcd   :  { %v1101_v43 = vmax.f32 %v215_v33, 0.0  ;;  %v210_v45 = vadd.f32 %v209_v24, %v78_v36  ;;  %v247_v57 = vsel %vm246_vm1, %v1119_v55, 0.0 }
  0xce   :  { %v897_v25 = vpop.f32.mrf.mxu0 }
  0xcf   :  { %v225_v30 = vadd.f32 %v897_v25, %v93_v21  ;;  %v256_v50 = vsel %vm246_vm1, %v1101_v43, 0.0  ;;  %v1113_v52 = vmax.f32 %v210_v45, 0.0 }
  0xd0   :  { %v219_v28 = vpop.f32.mrf.mxu0 }
  0xd1   :  { %v1095_v38 = vmax.f32 %v225_v30, 0.0  ;;  %v220_v39 = vadd.f32 %v219_v28, %v88_v26  ;;  %v253_v56 = vsel %vm246_vm1, %v1113_v52, 0.0 }
  0xd2   :  { %v900_v29 = vpop.f32.mrf.mxu0 }
  0xd3   :  { %v235_v31 = vadd.f32 %v900_v29, %v103_v18  ;;  %v1105_v46 = vmax.f32 %v220_v39, 0.0  ;;  %v262_v47 = vsel %vm246_vm1, %v1095_v38, 0.0 }
  0xd4   :  { %v229_v32 = vpop.f32.mrf.mxu0 }
  0xd5   :  { %v1093_v34 = vmax.f32 %v235_v31, 0.0  ;;  %v230_v35 = vadd.f32 %v229_v32, %v98_v22  ;;  %v259_v53 = vsel %vm246_vm1, %v1105_v46, 0.0 }
  0xd7   :  { %v1097_v40 = vmax.f32 %v230_v35, 0.0  ;;  %v268_v41 = vsel %vm246_vm1, %v1093_v34, 0.0  ;;  %v52_v35 = vld [vmem:[%s1287_s2] sm:$0xff] }
  0xd8   :  { %269 = vadd.xlane.f32.xlu0 %v268_v41  ;;  %917 = vmatprep.mubr.msk.f32.mxu1 %vm367_vm2, %v52_v35 }
  0xd9   :  { %v265_v44 = vsel %vm246_vm1, %v1097_v40, 0.0  ;;  %936 = vmatprep.mubr.msk.f32.mxu0 %vm367_vm2, %v52_v35 }
  0xda   :  { %266 = vadd.xlane.f32.xlu1 %v265_v44 }
  0xdc   :  { %263 = vadd.xlane.f32.xlu0 %v262_v47 }
  0xde   :  { %257 = vadd.xlane.f32.xlu1 %v256_v50 }
  0xe0   :  { %260 = vadd.xlane.f32.xlu0 %v259_v53 }
  0xe2   :  { %251 = vadd.xlane.f32.xlu1 %v250_v54 }
  0xe4   :  { %254 = vadd.xlane.f32.xlu0 %v253_v56 }
  0xe8   :  { %248 = vadd.xlane.f32.xlu0 %v247_v57 }
 0x161   :  { %v270_v58 = vpop.xlane.xlu0 %269 }
 0x162   :  { %v1125_v59 = vmul.f32 0.125, %v270_v58 }
 0x163   :  { %v267_v60 = vpop.xlane.xlu1 %266 }
 0x164   :  { %v286_v61 = vsub.f32 %v1093_v34, %v1125_v59  ;;  %v1129_v62 = vmul.f32 0.125, %v267_v60 }
 0x165   :  { %v264_v63 = vpop.xlane.xlu0 %263 }
 0x166   :  { %v285_v0 = vsub.f32 %v1097_v40, %v1129_v62  ;;  %v1133_v1 = vmul.f32 0.125, %v264_v63  ;;  %v294_v2 = vmul.f32 %v286_v61, %v286_v61 }
 0x167   :  { %v258_v3 = vpop.xlane.xlu1 %257 }
 0x168   :  { %v284_v4 = vsub.f32 %v1095_v38, %v1133_v1  ;;  %v1137_v5 = vmul.f32 0.125, %v258_v3  ;;  %v316_v6 = vsel %vm246_vm1, %v294_v2, 0.0  ;;  %v293_v7 = vmul.f32 %v285_v0, %v285_v0 }
 0x169   :  { %v261_v8 = vpop.xlane.xlu0 %260  ;;  %317 = vadd.xlane.f32.xlu1 %v316_v6 }
 0x16a   :  { %v282_v9 = vsub.f32 %v1101_v43, %v1137_v5  ;;  %v1142_v10 = vmul.f32 0.125, %v261_v8  ;;  %v313_v11 = vsel %vm246_vm1, %v293_v7, 0.0  ;;  %v292_v12 = vmul.f32 %v284_v4, %v284_v4  ;;  %v33_v4 = vld [vmem:[%s1288_s3 + $0x78] sm:$0xff]  ;;  %v32_v8 = vld [vmem:[%s1288_s3 + $0x70] sm:$0xff] }
 0x16b   :  { %314 = vadd.xlane.f32.xlu0 %v313_v11  ;;  %v252_v13 = vpop.xlane.xlu1 %251 }
 0x16c   :  { %v283_v14 = vsub.f32 %v1105_v46, %v1142_v10  ;;  %v1147_v15 = vmul.f32 0.125, %v252_v13  ;;  %v310_v16 = vsel %vm246_vm1, %v292_v12, 0.0  ;;  %v290_v17 = vmul.f32 %v282_v9, %v282_v9  ;;  %v41_v13 = vld [vmem:[%s1288_s3 + $0xb8] sm:$0xff] }
 0x16d   :  { %v255_v18 = vpop.xlane.xlu0 %254  ;;  %311 = vadd.xlane.f32.xlu1 %v310_v16 }
 0x16e   :  { %v280_v19 = vsub.f32 %v1109_v49, %v1147_v15  ;;  %v1152_v20 = vmul.f32 0.125, %v255_v18  ;;  %v291_v21 = vmul.f32 %v283_v14, %v283_v14  ;;  %v304_v24 = vsel %vm246_vm1, %v290_v17, 0.0  ;;  %v31_v14 = vld [vmem:[%s1288_s3 + $0x68] sm:$0xff] }
 0x170   :  { %v281_v22 = vsub.f32 %v1113_v52, %v1152_v20  ;;  %v307_v23 = vsel %vm246_vm1, %v291_v21, 0.0  ;;  %v288_v25 = vmul.f32 %v280_v19, %v280_v19  ;;  %v40_v19 = vld [vmem:[%s1288_s3 + $0xb0] sm:$0xff] }
 0x171   :  { %v249_v26 = vpop.xlane.xlu0 %248  ;;  %308 = vadd.xlane.f32.xlu0 %v307_v23  ;;  %305 = vadd.xlane.f32.xlu1 %v304_v24  ;;  %v30_v24 = vld [vmem:[%s1288_s3 + $0x60] sm:$0xff] }
 0x172   :  { %v1158_v27 = vmul.f32 0.125, %v249_v26  ;;  %v289_v28 = vmul.f32 %v281_v22, %v281_v22  ;;  %v298_v31 = vsel %vm246_vm1, %v288_v25, 0.0  ;;  %v39_v25 = vld [vmem:[%s1288_s3 + $0xa8] sm:$0xff] }
 0x174   :  { %v279_v29 = vsub.f32 %v1119_v55, %v1158_v27  ;;  %v301_v30 = vsel %vm246_vm1, %v289_v28, 0.0  ;;  %v29_v28 = vld [vmem:[%s1288_s3 + $0x58] sm:$0xff] }
 0x175   :  { %302 = vadd.xlane.f32.xlu0 %v301_v30  ;;  %299 = vadd.xlane.f32.xlu1 %v298_v31 }
 0x176   :  { %v287_v32 = vmul.f32 %v279_v29, %v279_v29 }
 0x178   :  { %v295_v33 = vsel %vm246_vm1, %v287_v32, 0.0 }
 0x179   :  { %296 = vadd.xlane.f32.xlu0 %v295_v33  ;;  %v28_v33 = vld [vmem:[%s1288_s3 + $0x50] sm:$0xff] }
 0x1f2   :  { %v318_v36 = vpop.xlane.xlu1 %317 }
 0x1f3   :  { %v326_v37 = vmul.f32 0.125, %v318_v36  ;;  %v27_v36 = vld [vmem:[%s1288_s3 + $0x48] sm:$0xff] }
 0x1f4   :  { %v315_v39 = vpop.xlane.xlu0 %314 }
 0x1f5   :  { %v334_v41 = vadd.f32 1e-05, %v326_v37  ;;  %v325_v42 = vmul.f32 0.125, %v315_v39  ;;  %v37_v39 = vld [vmem:[%s1288_s3 + $0x98] sm:$0xff] }
 0x1f6   :  { %v312_v44 = vpop.xlane.xlu1 %311 }
 0x1f7   :  { %959 = vrsqrt.f32 %v334_v41  ;;  %v333_v45 = vadd.f32 1e-05, %v325_v42  ;;  %v324_v47 = vmul.f32 0.125, %v312_v44 }
 0x1f9   :  { %961 = vrsqrt.f32 %v333_v45  ;;  %v332_v48 = vadd.f32 1e-05, %v324_v47 }
 0x1fa   :  { %v309_v50 = vpop.xlane.xlu0 %308  ;;  %v306_v51 = vpop.xlane.xlu1 %305 }
 0x1fb   :  { %963 = vrsqrt.f32 %v332_v48  ;;  %v323_v53 = vmul.f32 0.125, %v309_v50  ;;  %v322_v54 = vmul.f32 0.125, %v306_v51  ;;  %v36_v48 = vld [vmem:[%s1288_s3 + $0x90] sm:$0xff] }
 0x1fd   :  { %v331_v56 = vadd.f32 1e-05, %v323_v53  ;;  %v330_v57 = vadd.f32 1e-05, %v322_v54 }
 0x1fe   :  { %v303_v58 = vpop.xlane.xlu0 %302  ;;  %v300_v60 = vpop.xlane.xlu1 %299 }
 0x1ff   :  { %965 = vrsqrt.f32 %v331_v56  ;;  %v321_v61 = vmul.f32 0.125, %v303_v58  ;;  %v320_v63 = vmul.f32 0.125, %v300_v60  ;;  %v34_v58 = vld [vmem:[%s1288_s3 + $0x80] sm:$0xff] }
 0x200   :  { %967 = vrsqrt.f32 %v330_v57 }
 0x201   :  { %v329_v0 = vadd.f32 1e-05, %v321_v61  ;;  %v328_v2 = vadd.f32 1e-05, %v320_v63 }
 0x202   :  { %v297_v3 = vpop.xlane.xlu0 %296 }
 0x203   :  { %969 = vrsqrt.f32 %v329_v0  ;;  %v319_v6 = vmul.f32 0.125, %v297_v3 }
 0x204   :  { %v960_v7 = vpop.eup %959  ;;  %971 = vrsqrt.f32 %v328_v2 }
 0x205   :  { %v327_v9 = vadd.f32 1e-05, %v319_v6  ;;  %v350_v11 = vmul.f32 %v960_v7, %v33_v4 }
 0x206   :  { %v962_v12 = vpop.eup %961 }
 0x207   :  { %973 = vrsqrt.f32 %v327_v9  ;;  %486 = vperm.xlu1 %958, %v350_v11   ;;  %v349_v16 = vmul.f32 %v962_v12, %v32_v8  ;;  %v358_v17 = vmul.f32 %v350_v11, %v1125_v59 }
 0x208   :  { %v964_v18 = vpop.eup %963 }
 0x209   :  { %481 = vperm.xlu0 %957, %v349_v16   ;;  %v366_v21 = vsub.f32 %v41_v13, %v358_v17  ;;  %v348_v22 = vmul.f32 %v964_v18, %v31_v14  ;;  %v357_v23 = vmul.f32 %v349_v16, %v1129_v62 }
 0x20b   :  { %901 = vmatprep.subr.mxu1 %v366_v21  ;;  %476 = vperm.xlu1 %958, %v348_v22   ;;  %v365_v59 = vsub.f32 %v40_v19, %v357_v23  ;;  %v356_v26 = vmul.f32 %v348_v22, %v1133_v1  ;;  %v38_v1 = vld [vmem:[%s1288_s3 + $0xa0] sm:$0xff] }
 0x20c   :  { %v966_v29 = vpop.eup %965  ;;  %902 = vmatpush3.msra.mxu1 %v366_v21 }
 0x20d   :  { %v968_v62 = vpop.eup %967  ;;  %903 = vmatprep.subr.mxu1 %v365_v59  ;;  %v347_v30 = vmul.f32 %v966_v29, %v30_v24  ;;  %v364_v31 = vsub.f32 %v39_v25, %v356_v26 }
 0x20e   :  { %904 = vmatpush3.msra.mxu1 %v365_v59  ;;  %v346_v32 = vmul.f32 %v968_v62, %v29_v28 }
 0x20f   :  { %471 = vperm.xlu1 %958, %v347_v30   ;;  %905 = vmatprep.subr.mxu1 %v364_v31  ;;  %v355_v35 = vmul.f32 %v347_v30, %v1142_v10  ;;  %v26_v10 = vld [vmem:[%s1288_s3 + $0x40] sm:$0xff] }
 0x210   :  { %v970_v37 = vpop.eup %969  ;;  %466 = vperm.xlu0 %957, %v346_v32   ;;  %906 = vmatpush3.msra.mxu1 %v364_v31  ;;  %v354_v41 = vmul.f32 %v346_v32, %v1137_v5  ;;  %v35_v5 = vld [vmem:[%s1288_s3 + $0x88] sm:$0xff] }
 0x211   :  { %v972_v42 = vpop.eup %971  ;;  %v345_v44 = vmul.f32 %v970_v37, %v28_v33  ;;  %v363_v45 = vsub.f32 %v38_v1, %v355_v35 }
 0x212   :  { %v344_v47 = vmul.f32 %v972_v42, %v27_v36  ;;  %v362_v50 = vsub.f32 %v37_v39, %v354_v41  ;;  %v1004_v36 = vmov 0.0  }
 0x213   :  { %461 = vperm.xlu1 %958, %v345_v44   ;;  %907 = vmatprep.subr.mxu1 %v363_v45  ;;  %v353_v51 = vmul.f32 %v345_v44, %v1152_v20 }
 0x214   :  { %v974_v53 = vpop.eup %973  ;;  %456 = vperm.xlu0 %957, %v344_v47   ;;  %908 = vmatpush3.msra.mxu1 %v363_v45  ;;  %v352_v54 = vmul.f32 %v344_v47, %v1147_v15  ;;  %v53_v15 = vld [vmem:[%s1287_s2 + $0x8] sm:$0xff]  ;;  %v45_v47 = vld [vmem:[%s1288_s3 + $0xd8] sm:$0xff] }
 0x215   :  { %909 = vmatprep.subr.mxu1 %v362_v50  ;;  %v343_v56 = vmul.f32 %v974_v53, %v26_v10  ;;  %v361_v57 = vsub.f32 %v36_v48, %v353_v51  ;;  %v44_v51 = vld [vmem:[%s1288_s3 + $0xd0] sm:$0xff] }
 0x216   :  { %910 = vmatpush3.msra.mxu1 %v362_v50  ;;  %v360_v20 = vsub.f32 %v35_v5, %v352_v54  ;;  %v47_v50 = vld [vmem:[%s1288_s3 + $0xe8] sm:$0xff] }
 0x217   :  { %451 = vperm.xlu1 %958, %v343_v56   ;;  %911 = vmatprep.subr.mxu1 %v361_v57  ;;  %v351_v60 = vmul.f32 %v343_v56, %v1158_v27 }
 0x218   :  { %912 = vmatpush3.msra.mxu1 %v361_v57  ;;  %v46_v57 = vld [vmem:[%s1288_s3 + $0xe0] sm:$0xff] }
 0x219   :  { %913 = vmatprep.subr.mxu1 %v360_v20  ;;  %v359_v61 = vsub.f32 %v34_v58, %v351_v60  ;;  %v54_v60 = vld [vmem:[%s1287_s2 + $0x10] sm:$0xff] }
 0x21a   :  { %914 = vmatpush3.msra.mxu1 %v360_v20 }
 0x21b   :  { %915 = vmatprep.subr.mxu1 %v359_v61 }
 0x21c   :  { %916 = vmatpush3.msra.mxu1 %v359_v61 }
 0x21d   :  { %918 = vmatmul.mubr.msk.f32.vlgmr.msra.gmra.mxu1 %vm367_vm2, %v53_v15  ;;  %939 = vmatprep.subr.mxu1 %v1004_v36 }
 0x21e   :  { %943 = vmatprep.mubr.msk.f32.mxu1 %vm1005_vm3, %v1004_v36 }
 0x282   :  { %v487_v63 = vpop.permute.xlu1 %486 }
 0x283   :  { %v496_v0 = vmul.f32 %v487_v63, %v1093_v34 }
 0x284   :  { %v482_v2 = vpop.permute.xlu0 %481 }
 0x285   :  { %v495_v3 = vmul.f32 %v482_v2, %v1097_v40  ;;  %920 = vmatprep.subr.mxu0 %v496_v0  ;;  %v48_v2 = vld [vmem:[%s1288_s3 + $0xf0] sm:$0xff] }
 0x286   :  { %921 = vmatpush3.msra.mxu0 %v496_v0  ;;  %v477_v27 = vpop.permute.xlu1 %476 }
 0x287   :  { %v494_v4 = vmul.f32 %v477_v27, %v1095_v38  ;;  %922 = vmatprep.subr.mxu0 %v495_v3 }
 0x288   :  { %923 = vmatpush3.msra.mxu0 %v495_v3 }
 0x289   :  { %924 = vmatprep.subr.mxu0 %v494_v4 }
 0x28a   :  { %925 = vmatpush3.msra.mxu0 %v494_v4  ;;  %v472_v6 = vpop.permute.xlu1 %471 }
 0x28b   :  { %v467_v7 = vpop.permute.xlu0 %466  ;;  %v493_v8 = vmul.f32 %v472_v6, %v1105_v46 }
 0x28c   :  { %v492_v9 = vmul.f32 %v467_v7, %v1101_v43  ;;  %v43_v43 = vld [vmem:[%s1288_s3 + $0xc8] sm:$0xff] }
 0x28d   :  { %926 = vmatprep.subr.mxu0 %v493_v8 }
 0x28e   :  { %927 = vmatpush3.msra.mxu0 %v493_v8  ;;  %v462_v34 = vpop.permute.xlu1 %461 }
 0x28f   :  { %v457_v11 = vpop.permute.xlu0 %456  ;;  %v491_v40 = vmul.f32 %v462_v34, %v1113_v52  ;;  %928 = vmatprep.subr.mxu0 %v492_v9 }
 0x290   :  { %929 = vmatpush3.msra.mxu0 %v492_v9  ;;  %v490_v38 = vmul.f32 %v457_v11, %v1109_v49  ;;  %v42_v49 = vld [vmem:[%s1288_s3 + $0xc0] sm:$0xff] }
 0x291   :  { %930 = vmatprep.subr.mxu0 %v491_v40 }
 0x292   :  { %931 = vmatpush3.msra.mxu0 %v491_v40  ;;  %v452_v12 = vpop.permute.xlu1 %451 }
 0x293   :  { %v489_v13 = vmul.f32 %v452_v12, %v1119_v55  ;;  %932 = vmatprep.subr.mxu0 %v490_v38 }
 0x294   :  { %933 = vmatpush3.msra.mxu0 %v490_v38 }
 0x295   :  { %934 = vmatprep.subr.mxu0 %v489_v13 }
 0x296   :  { %935 = vmatpush3.msra.mxu0 %v489_v13 }
 0x297   :  { %937 = vmatmul.mubr.msk.f32.vlgmr.msra.gmra.mxu0 %vm367_vm2, %v53_v15  ;;  %946 = vmatprep.subr.mxu0 %v1004_v36 }
 0x298   :  { %950 = vmatprep.mubr.msk.f32.mxu0 %vm1005_vm3, %v1004_v36 }
 0x2dd   :  { %v919_v46 = vpop.f32.mrf.mxu1 }
 0x2de   :  { %v446_v52 = vadd.f32 %v919_v46, %v43_v43 }
 0x2df   :  { %v440_v14 = vpop.f32.mrf.mxu1 }
 0x2e0   :  { %v441_v16 = vadd.f32 %v440_v14, %v42_v49  ;;  %504 = vperm.xlu0 %957, %v446_v52   ;;  %v49_v14 = vld [vmem:[%s1288_s3 + $0xf8] sm:$0xff] }
 0x2e2   :  { %499 = vperm.xlu1 %958, %v441_v16  }
 0x357   :  { %v938_v55 = vpop.f32.mrf.mxu0 }
 0x359   :  { %v573_v19 = vpop.f32.mrf.mxu0 }
 0x35b   :  { %v505_v17 = vpop.permute.xlu0 %504 }
 0x35c   :  { %v579_v18 = vadd.f32 %v938_v55, %v505_v17  ;;  %v55_v55 = vld [vmem:[%s1287_s2 + $0x18] sm:$0xff]  ;;  %s1006_s2 = smov [#allocation2]  }
 0x35d   :  { %v500_v21 = vpop.permute.xlu1 %499  ;;  %s829_s24 = sshll.u32 %s1006_s2, 4  ;;  %s830_s24 = int_to_ptr.vmem [resolvable:$true] %s829_s24 }
 0x35e   :  { %v583_v22 = vmax.f32 %v579_v18, 0.0  ;;  %v574_v23 = vadd.f32 %v573_v19, %v500_v21  ;;  %v50_v18 = vld [vmem:[%s1288_s3 + $0x100] sm:$0xff]  ;;  %s985_s25 = scalar_lea.vmem %s830_s24, 32  ;;  %p986_p1 = scmp.lt.s32.totalorder %s830_s24, %s830_s24 }
 0x360   :  { %v582_v24 = vmax.f32 %v574_v23, 0.0  ;;  %v587_v25 = vsel %vm246_vm1, %v583_v22, 0.0 }
 0x361   :  { %588 = vadd.xlane.f32.xlu0 %v587_v25 }
 0x362   :  { %v584_v59 = vsel %vm246_vm1, %v582_v24, 0.0 }
 0x363   :  { %585 = vadd.xlane.f32.xlu1 %v584_v59 }
 0x3ea   :  { %v589_v26 = vpop.xlane.xlu0 %588 }
 0x3eb   :  { %v591_v28 = vmul.f32 0.125, %v589_v26 }
 0x3ec   :  { %v586_v29 = vpop.xlane.xlu1 %585 }
 0x3ed   :  { %v593_v62 = vsub.f32 %v583_v22, %v591_v28  ;;  %v590_v30 = vmul.f32 0.125, %v586_v29 }
 0x3ef   :  { %v592_v31 = vsub.f32 %v582_v24, %v590_v30  ;;  %v595_v32 = vmul.f32 %v593_v62, %v593_v62  ;;  %v51_v62 = vld [vmem:[%s1288_s3 + $0x108] sm:$0x1]  ;;  %s981_s3 = scalar_lea.vmem %s830_s24, 16 }
 0x3f0   :  { %p982_p0 = scmp.ne.s32.totalorder %s830_s24, %s981_s3  ;;  %p987_p2 = scmp.lt.s32.totalorder %s985_s25, %s981_s3 }
 0x3f1   :  { %v599_v33 = vsel %vm246_vm1, %v595_v32, 0.0  ;;  %v594_v1 = vmul.f32 %v592_v31, %v592_v31 }
 0x3f2   :  { %600 = vadd.xlane.f32.xlu0 %v599_v33  ;;  %p988_p3 = por %p987_p2, %p986_p1 }
 0x3f3   :  { %v596_v35 = vsel %vm246_vm1, %v594_v1, 0.0 }
 0x3f4   :  { %p989_p4 = pnand %p988_p3, %p982_p0 }
 0x3f6   :  { %597 = vadd.xlane.f32.xlu0 %v596_v35 }
 0x47b   :  { %v601_v37 = vpop.xlane.xlu0 %600 }
 0x47c   :  { %v603_v39 = vmul.f32 0.125, %v601_v37 }
 0x47e   :  { %v605_v41 = vadd.f32 1e-05, %v603_v39 }
 0x47f   :  { %v598_v42 = vpop.xlane.xlu0 %597 }
 0x480   :  { %975 = vrsqrt.f32 %v605_v41  ;;  %v602_v44 = vmul.f32 0.125, %v598_v42 }
 0x482   :  { %v604_v45 = vadd.f32 1e-05, %v602_v44 }
 0x484   :  { %977 = vrsqrt.f32 %v604_v45 }
 0x48d   :  { %v976_v10 = vpop.eup %975 }
 0x48e   :  { %v609_v48 = vmul.f32 %v976_v10, %v45_v47 }
 0x490   :  { %v611_v53 = vmul.f32 %v609_v48, %v591_v28  ;;  %695 = vperm.xlu1 %958, %v609_v48  }
 0x491   :  { %v978_v5 = vpop.eup %977 }
 0x492   :  { %v613_v54 = vsub.f32 %v47_v50, %v611_v53  ;;  %v608_v56 = vmul.f32 %v978_v5, %v44_v51 }
 0x494   :  { %940 = vmatpush3.msra.mxu1 %v613_v54  ;;  %690 = vperm.xlu0 %957, %v608_v56   ;;  %v610_v58 = vmul.f32 %v608_v56, %v590_v30 }
 0x495   :  { %941 = vmatprep.subr.mxu1 %v1004_v36 }
 0x496   :  { %v612_v20 = vsub.f32 %v46_v57, %v610_v58 }
 0x498   :  { %942 = vmatpush3.msra.mxu1 %v612_v20 }
 0x499   :  { %944 = vmatmul.mubr.msk.f32.vlgmr.msra.gmra.mxu1 %vm614_vm4, %v54_v60 }
 0x50b   :  { %v696_v61 = vpop.permute.xlu1 %695 }
 0x50c   :  { %v699_v15 = vmul.f32 %v696_v61, %v583_v22 }
 0x50e   :  { %947 = vmatpush3.msra.mxu0 %v699_v15 }
 0x50f   :  { %v691_v63 = vpop.permute.xlu0 %690  ;;  %948 = vmatprep.subr.mxu0 %v1004_v36 }
 0x510   :  { %v698_v0 = vmul.f32 %v691_v63, %v582_v24 }
 0x512   :  { %949 = vmatpush3.msra.mxu0 %v698_v0 }
 0x513   :  { %951 = vmatmul.mubr.msk.f32.vlgmr.msra.gmra.mxu0 %vm614_vm4, %v54_v60 }
 0x559   :  { %v684_v3 = vpop.f32.mrf.mxu1 }
 0x55a   :  { %v685_v27 = vadd.f32 %v684_v3, %v48_v2 }
 0x55b   :  { %v945_v4 = vpop.f32.mrf.mxu1 }
 0x55c   :  { %702 = vperm.xlu1 %958, %v685_v27  }
 0x5d3   :  { %v771_v6 = vpop.f32.mrf.mxu0 }
 0x5d5   :  { %v952_v7 = vpop.f32.mrf.mxu0 }
 0x5d7   :  { %v703_v8 = vpop.permute.xlu1 %702 }
 0x5d8   :  { %v772_v9 = vadd.f32 %v771_v6, %v703_v8 }
 0x5da   :  { %v775_v34 = vmax.f32 %v772_v9, 0.0 }
 0x5dc   :  { %v776_v11 = vsel %vm246_vm1, %v775_v34, 0.0 }
 0x5dd   :  { %777 = vadd.xlane.f32.xlu1 %v776_v11 }
 0x666   :  { %v778_v40 = vpop.xlane.xlu1 %777 }
 0x667   :  { %v779_v38 = vmul.f32 0.125, %v778_v40 }
 0x669   :  { %v780_v12 = vsub.f32 %v775_v34, %v779_v38 }
 0x66b   :  { %v781_v13 = vmul.f32 %v780_v12, %v780_v12 }
 0x66d   :  { %v782_v43 = vsel %vm246_vm1, %v781_v13, 0.0 }
 0x66e   :  { %783 = vadd.xlane.f32.xlu0 %v782_v43 }
 0x6f7   :  { %v784_v46 = vpop.xlane.xlu0 %783 }
 0x6f8   :  { %v785_v49 = vmul.f32 0.125, %v784_v46 }
 0x6fa   :  { %v786_v52 = vadd.f32 1e-05, %v785_v49 }
 0x6fc   :  { %979 = vrsqrt.f32 %v786_v52 }
 0x709   :  { %v980_v16 = vpop.eup %979 }
 0x70a   :  { %v788_v17 = vmul.f32 %v980_v16, %v49_v14 }
 0x70c   :  { %v801_v19 = vmul.f32 %v788_v17, %v55_v55  ;;  %v789_v21 = vmul.f32 %v788_v17, %v779_v38 }
 0x70e   :  { %804 = vperm.xlu0 %957, %v801_v19   ;;  %v790_v22 = vsub.f32 %v50_v18, %v789_v21 }
 0x710   :  { %v791_v23 = vmul.f32 %v790_v22, %v55_v55 }
 0x712   :  { %v793_v24 = vsel %vm792_vm5, %v791_v23, 0.0 }
 0x713   :  { %v794_v25 = vrot.slane %v793_v24, 4 }
 0x715   :  { %v795_v59 = vadd.f32 %v794_v25, %v793_v24 }
 0x717   :  { %v796_v26 = vrot.slane %v795_v59, 2 }
 0x719   :  { %v797_v28 = vadd.f32 %v796_v26, %v795_v59 }
 0x71b   :  { %v798_v29 = vrot.slane %v797_v28, 1 }
 0x71d   :  { %v799_v30 = vadd.f32 %v798_v29, %v797_v28 }
 0x71f   :  { %v800_v31 = vadd.f32 %v799_v30, %v51_v62 }
 0x721   :  { %817 = vperm.xlu1 %958, %v800_v31  }
 0x789   :  { %v805_v32 = vpop.permute.xlu0 %804 }
 0x78a   :  { %v807_v33 = vmul.f32 %v805_v32, %v775_v34 }
 0x78c   :  { %v808_v1 = vsel %vm246_vm1, %v807_v33, 0.0 }
 0x78d   :  { %v809_v35 = vrot.slane %v808_v1, 4 }
 0x78f   :  { %v810_v36 = vadd.f32 %v809_v35, %v808_v1 }
 0x791   :  { %v811_v37 = vrot.slane %v810_v36, 2 }
 0x793   :  { %v812_v39 = vadd.f32 %v811_v37, %v810_v36 }
 0x795   :  { %v813_v41 = vrot.slane %v812_v39, 1 }
 0x797   :  { %v814_v42 = vadd.f32 %v813_v41, %v812_v39 }
 0x79c   :  { %v818_v44 = vpop.permute.xlu1 %817 }
 0x79d   :  { %v820_v45 = vadd.f32 %v818_v44, %v814_v42 }
 0x79f   :  { %822 = vst.msk [vmem:[#allocation2] sm:$0x1] %vm821_vm6, %v820_v45 }
 0x7a0   :  { %992 = shalt.err (!%p989_p4)
}
 0x7a1   :  { %832 = dma.vmem_to_hbm [thread:$0]  %s830_s24, 16, %s1289_s4, [#allocation3]  }
 0x7a2   :  { %1001 = dma.done.wait [#allocation3], 16  }
 0x7a3   :  { %1002 = vsyncadd [#allocation3], 4294967280 }
 0x7a4   :  { %836 = vsyncpa [#allocation3], 1 }

</bundles_post_ra>
